<compile_context>
chip_gen: v7x
topology: tpu7x:2x2x1
jax: 0.10.0
libtpu: 0.0.40
codegen_flags: <defaults>
</compile_context>

<pallas_src>
import functools

import jax
import jax.numpy as jnp
from jax import lax
from jax.experimental import pallas as pl
from jax.experimental.pallas import tpu as pltpu


def _round_up(a, b):
    return -(-a // b) * b


def _dwsep_mxu_kernel(x_ref, xh_ref, w_ref, b_ref, o_ref, ext_ref, x9_ref, *,
                      taps, c_in_p):
    # x_ref:   (1, C_in_p, TL)      body lane chunk of the padded flat input
    # xh_ref:  (1, C_in_p, HALO)    next HALO lanes (tap look-ahead window)
    # w_ref:   (C_out_t, 9*C_in_p)  folded depthwise*pointwise weights
    # b_ref:   (C_out_t, 1)         fused bias (f32)
    # o_ref:   (1, C_out_t, TL)     dense (stride-1) output chunk
    # ext_ref: (C_in_p, TL+HALO)    staging slab (MXU operand dtype)
    # x9_ref:  (9*C_in_p, TL)       stacked rolled slabs = MXU RHS
    tl = x_ref.shape[-1]
    ext_ref[:, :tl] = x_ref[0].astype(ext_ref.dtype)
    ext_ref[:, tl:] = xh_ref[0].astype(ext_ref.dtype)
    ext = ext_ref[...]
    ext_len = ext.shape[1]

    # Stage the 9 taps as lane rotations (XLU slot) of the extended slab; the
    # halo guarantees every valid output lane reads real data (no wraparound).
    for idx in range(9):
        s = taps[idx]
        xs = ext if s == 0 else pltpu.roll(ext, shift=ext_len - s, axis=1)
        x9_ref[idx * c_in_p:(idx + 1) * c_in_p, :] = xs[:, :tl]

    # Single MXU contraction over K = 9*C_in_p (depthwise + pointwise fused).
    y = jnp.dot(w_ref[...], x9_ref[...], preferred_element_type=jnp.float32)
    o_ref[0] = (y + b_ref[...]).astype(o_ref.dtype)


def depthwise_conv(x, w_dw, b_dw, w_pw, b_pw, *, stride=1, dilation=1,
                   lane_tile=2048, cout_tile=256, matmul_dtype=None):
    """x: (B, C_in, H, W) NCHW.  w_dw: (C_in, 3, 3), b_dw: (C_in,),
    w_pw: (C_out, C_in), b_pw: (C_out,).  Returns (B, C_out, H_out, W_out)."""
    B, C_in, H, W = x.shape
    C_out = w_pw.shape[0]
    pad = dilation                                  # PyTorch: padding=dilation_rate
    h_out = (H + 2 * pad - 2 * dilation - 1) // stride + 1
    w_out = (W + 2 * pad - 2 * dilation - 1) // stride + 1
    Hp, Wp = H + 2 * pad, W + 2 * pad
    n = Hp * Wp

    op_dtype = jnp.dtype(x.dtype if matmul_dtype is None else matmul_dtype)
    bytes_x = jnp.dtype(x.dtype).itemsize
    bytes_op = op_dtype.itemsize

    # --- channel padding / C_out tiling ------------------------------------
    c_in_p = _round_up(C_in, 8)
    cout_tile = min(_round_up(max(cout_tile, 8), 8), _round_up(C_out, 8))
    c_out_p = _round_up(C_out, cout_tile)
    n_co = c_out_p // cout_tile

    # --- spatial (flat-lane) tiling with halo -------------------------------
    s_max = 2 * dilation * Wp + 2 * dilation        # largest tap offset
    halo = _round_up(s_max, 128)
    tl = max(halo, (max(lane_tile, halo) // halo) * halo)

    def _step_bytes(t):
        dbl = 2 * (c_in_p * t * bytes_x + c_in_p * halo * bytes_x
                   + cout_tile * 9 * c_in_p * bytes_op + cout_tile * 4
                   + cout_tile * t * bytes_x)
        scratch = (c_in_p * (t + halo) + 9 * c_in_p * t) * bytes_op
        live_f32 = cout_tile * t * 4
        return dbl + scratch + live_f32

    # Budget for the smallest-VMEM generation (v7x: 64 MiB phys / 32 MiB scoped).
    budget = 24 * 1024 * 1024
    while tl > halo and _step_bytes(tl) > budget:
        tl -= halo

    n_chunks = -(-n // tl)
    n_body = n_chunks * tl
    n_total = n_body + halo        # extra zero tail backs the last halo block

    # --- HBM-side glue (keep under the caller's jit so XLA fuses the pads) ---
    x_p = jnp.pad(x, ((0, 0), (0, c_in_p - C_in), (pad, pad), (pad, pad)))
    x_flat = x_p.reshape(B, c_in_p, n)
    x_flat = jnp.pad(x_flat, ((0, 0), (0, 0), (0, n_total - n)))

    w_dw_p = jnp.pad(w_dw.reshape(C_in, 9).astype(jnp.float32),
                     ((0, c_in_p - C_in), (0, 0)))
    w_pw_p = jnp.pad(w_pw.astype(jnp.float32),
                     ((0, c_out_p - C_out), (0, c_in_p - C_in)))
    # Fold the 9 depthwise taps into the pointwise contraction (one MXU dot).
    w_comb = (w_pw_p[:, None, :] * w_dw_p.T[None, :, :]
              ).reshape(c_out_p, 9 * c_in_p).astype(op_dtype)
    # The 1x1 conv is linear, so the depthwise bias commutes through it.
    b_eff = (jnp.pad(b_pw.astype(jnp.float32), (0, c_out_p - C_out))
             + w_pw_p @ jnp.pad(b_dw.astype(jnp.float32), (0, c_in_p - C_in))
             ).reshape(c_out_p, 1)

    taps = tuple(kh * dilation * Wp + kw * dilation
                 for kh in range(3) for kw in range(3))
    kernel = functools.partial(_dwsep_mxu_kernel, taps=taps, c_in_p=c_in_p)
    tpb = tl // halo               # body-tile length measured in halo blocks

    out_flat = pl.pallas_call(
        kernel,
        out_shape=jax.ShapeDtypeStruct((B, c_out_p, n_body), x.dtype),
        grid_spec=pltpu.PrefetchScalarGridSpec(
            num_scalar_prefetch=0,
            grid=(B, n_co, n_chunks),
            in_specs=[
                pl.BlockSpec((1, c_in_p, tl), lambda b, co, c: (b, 0, c)),
                pl.BlockSpec((1, c_in_p, halo),
                             lambda b, co, c: (b, 0, (c + 1) * tpb)),
                pl.BlockSpec((cout_tile, 9 * c_in_p), lambda b, co, c: (co, 0)),
                pl.BlockSpec((cout_tile, 1), lambda b, co, c: (co, 0)),
            ],
            out_specs=pl.BlockSpec((1, cout_tile, tl),
                                   lambda b, co, c: (b, co, c)),
            scratch_shapes=[
                pltpu.VMEM((c_in_p, tl + halo), op_dtype),
                pltpu.VMEM((9 * c_in_p, tl), op_dtype),
            ]),
        compiler_params=pltpu.CompilerParams(
            dimension_semantics=("parallel", "parallel", "parallel"),
            vmem_limit_bytes=32 * 1024 * 1024),
    )(x_flat, x_flat, w_comb, b_eff)

    # Kernel produced the dense stride-1 conv over the padded slab; extract the
    # (stride, dilation) output window with cheap HBM slices.
    # TODO(synk): add an in-kernel strided/decimated store path to remove the
    # ~stride^2 overcompute + extra HBM pass when stride > 1 is hot.
    # TODO(synk): for very large C_in, a per-channel tap-FMA (VPU) path with a
    # C_in grid axis avoids the 9x staged-operand VMEM of the folded MXU path.
    y = out_flat[:, :C_out, :n].reshape(B, C_out, Hp, Wp)
    y = y[:, :,
          : (h_out - 1) * stride + 1: stride,
          : (w_out - 1) * stride + 1: stride]
    return y


def _reference(x, w_dw, b_dw, w_pw, b_pw, *, stride=1, dilation=1):
    """Plain-JAX reference matching PyTorch Conv2d semantics."""
    C_in = x.shape[1]
    pad = dilation
    dn = ("NCHW", "OIHW", "NCHW")
    y = lax.conv_general_dilated(
        x, w_dw[:, None, :, :], window_strides=(stride, stride),
        padding=[(pad, pad), (pad, pad)], rhs_dilation=(dilation, dilation),
        feature_group_count=C_in, dimension_numbers=dn)
    y = y + b_dw[None, :, None, None]
    y = lax.conv_general_dilated(
        y, w_pw[:, :, None, None], window_strides=(1, 1),
        padding=[(0, 0), (0, 0)], dimension_numbers=dn)
    return y + b_pw[None, :, None, None]


if __name__ == "__main__":
    key = jax.random.PRNGKey(0)
    k_x, k_wdw, k_bdw, k_wpw, k_bpw = jax.random.split(key, 5)

    B, C_in, C_out, H, W = 2, 4, 8, 16, 16
    x = jax.random.normal(k_x, (B, C_in, H, W), jnp.float32)
    # Deterministic synthetic parameters (PyTorch shapes, squeezed where trivial).
    w_dw = jax.random.normal(k_wdw, (C_in, 3, 3), jnp.float32) * 0.1   # (C_in,1,3,3) squeezed
    b_dw = jax.random.normal(k_bdw, (C_in,), jnp.float32) * 0.1
    w_pw = jax.random.normal(k_wpw, (C_out, C_in), jnp.float32) * 0.1  # (C_out,C_in,1,1) squeezed
    b_pw = jax.random.normal(k_bpw, (C_out,), jnp.float32) * 0.1

    # f32 path over the module's constructor options.  lane_tile=256 forces
    # multiple spatial chunks even at this tiny size, exercising the halo path.
    for stride, dilation in ((1, 1), (2, 1), (1, 2)):
        fn = jax.jit(functools.partial(depthwise_conv, stride=stride,
                                       dilation=dilation, lane_tile=256))
        out = jax.block_until_ready(fn(x, w_dw, b_dw, w_pw, b_pw))
        ref = _reference(x, w_dw, b_dw, w_pw, b_pw,
                         stride=stride, dilation=dilation)
        assert out.shape == ref.shape, (stride, dilation, out.shape, ref.shape)
        assert jnp.allclose(out, ref, rtol=1e-3, atol=1e-3), \
            ("mismatch vs reference", stride, dilation)

    # bf16 path: bf16 staging rolls + bf16 MXU operands (f32 accumulate).
    xb = x.astype(jnp.bfloat16)
    wdwb = w_dw.astype(jnp.bfloat16)
    bdwb = b_dw.astype(jnp.bfloat16)
    wpwb = w_pw.astype(jnp.bfloat16)
    bpwb = b_pw.astype(jnp.bfloat16)
    fn = jax.jit(functools.partial(depthwise_conv, stride=1, dilation=1,
                                   lane_tile=256))
    outb = jax.block_until_ready(fn(xb, wdwb, bdwb, wpwb, bpwb))
    refb = _reference(xb.astype(jnp.float32), wdwb.astype(jnp.float32),
                      bdwb.astype(jnp.float32), wpwb.astype(jnp.float32),
                      bpwb.astype(jnp.float32), stride=1, dilation=1)
    assert outb.shape == refb.shape
    assert jnp.allclose(outb.astype(jnp.float32), refb, rtol=2e-2, atol=2e-2), \
        "mismatch vs reference (bf16 path)"

    print("KERNEL_OK")
</pallas_src>

<mosaic_0001>
module attributes {stable_mosaic.version = 11 : i64} {
  func.func @_dwsep_mxu_kernel(%arg0: i32, %arg1: i32, %arg2: i32, %arg3: memref<1x8x256xf32, #tpu.memory_space<vmem>>, %arg4: memref<1x8x128xf32, #tpu.memory_space<vmem>>, %arg5: memref<8x72xf32, #tpu.memory_space<vmem>>, %arg6: memref<8x1xf32, #tpu.memory_space<vmem>>, %arg7: memref<1x8x256xf32, #tpu.memory_space<vmem>>, %arg8: memref<8x384xf32, #tpu.memory_space<vmem>>, %arg9: memref<72x256xf32, #tpu.memory_space<vmem>>) attributes {dimension_semantics = [#tpu.dimension_semantics<parallel>, #tpu.dimension_semantics<parallel>, #tpu.dimension_semantics<parallel>], iteration_bounds = array<i64: 2, 1, 2>, scalar_prefetch = 0 : i64, scratch_operands = 2 : i64, tpu.core_type = #tpu.core_type<tc>, window_params = [{transform_indices = @transform_0, window_bounds = array<i64: 1, 8, 256>}, {transform_indices = @transform_1, window_bounds = array<i64: 1, 8, 128>}, {transform_indices = @transform_2, window_bounds = array<i64: 8, 72>}, {transform_indices = @transform_3, window_bounds = array<i64: 8, 1>}, {transform_indices = @transform_4, window_bounds = array<i64: 1, 8, 256>}]} {
    %c0 = arith.constant 0 : index
    %c0_0 = arith.constant 0 : index
    %c0_1 = arith.constant 0 : index
    %0 = vector.load %arg3[%c0, %c0_0, %c0_1] : memref<1x8x256xf32, #tpu.memory_space<vmem>>, vector<1x8x256xf32>
    %1 = vector.shape_cast %0 : vector<1x8x256xf32> to vector<8x256xf32>
    %c0_2 = arith.constant 0 : index
    %c0_3 = arith.constant 0 : index
    %2 = vector.load %arg8[%c0_2, %c0_3] : memref<8x384xf32, #tpu.memory_space<vmem>>, vector<8x256xf32>
    tpu.vector_store %arg8[%c0_2, %c0_3], %1 {strides = array<i32>} : memref<8x384xf32, #tpu.memory_space<vmem>>, vector<8x256xf32>,
    %c0_4 = arith.constant 0 : index
    %c0_5 = arith.constant 0 : index
    %c0_6 = arith.constant 0 : index
    %3 = vector.load %arg4[%c0_4, %c0_5, %c0_6] : memref<1x8x128xf32, #tpu.memory_space<vmem>>, vector<1x8x128xf32>
    %4 = vector.shape_cast %3 : vector<1x8x128xf32> to vector<8x128xf32>
    %c0_7 = arith.constant 0 : index
    %c256 = arith.constant 256 : index
    %5 = vector.load %arg8[%c0_7, %c256] : memref<8x384xf32, #tpu.memory_space<vmem>>, vector<8x128xf32>
    tpu.vector_store %arg8[%c0_7, %c256], %4 {strides = array<i32>} : memref<8x384xf32, #tpu.memory_space<vmem>>, vector<8x128xf32>,
    %c0_8 = arith.constant 0 : index
    %c0_9 = arith.constant 0 : index
    %6 = vector.load %arg8[%c0_8, %c0_9] : memref<8x384xf32, #tpu.memory_space<vmem>>, vector<8x384xf32>
    %7 = vector.extract_strided_slice %6 {offsets = [0, 0], sizes = [8, 256], strides = [1, 1]} : vector<8x384xf32> to vector<8x256xf32>
    %c0_10 = arith.constant 0 : index
    %c0_11 = arith.constant 0 : index
    %8 = vector.load %arg9[%c0_10, %c0_11] : memref<72x256xf32, #tpu.memory_space<vmem>>, vector<8x256xf32>
    tpu.vector_store %arg9[%c0_10, %c0_11], %7 {strides = array<i32>} : memref<72x256xf32, #tpu.memory_space<vmem>>, vector<8x256xf32>,
    %c383_i32 = arith.constant 383 : i32
    %9 = tpu.dynamic_rotate %6 by %c383_i32 dim 1 : vector<8x384xf32>, i32 -> vector<8x384xf32>
    %10 = vector.extract_strided_slice %9 {offsets = [0, 0], sizes = [8, 256], strides = [1, 1]} : vector<8x384xf32> to vector<8x256xf32>
    %c8 = arith.constant 8 : index
    %c0_12 = arith.constant 0 : index
    %11 = vector.load %arg9[%c8, %c0_12] : memref<72x256xf32, #tpu.memory_space<vmem>>, vector<8x256xf32>
    tpu.vector_store %arg9[%c8, %c0_12], %10 {strides = array<i32>} : memref<72x256xf32, #tpu.memory_space<vmem>>, vector<8x256xf32>,
    %c382_i32 = arith.constant 382 : i32
    %12 = tpu.dynamic_rotate %6 by %c382_i32 dim 1 : vector<8x384xf32>, i32 -> vector<8x384xf32>
    %13 = vector.extract_strided_slice %12 {offsets = [0, 0], sizes = [8, 256], strides = [1, 1]} : vector<8x384xf32> to vector<8x256xf32>
    %c16 = arith.constant 16 : index
    %c0_13 = arith.constant 0 : index
    %14 = vector.load %arg9[%c16, %c0_13] : memref<72x256xf32, #tpu.memory_space<vmem>>, vector<8x256xf32>
    tpu.vector_store %arg9[%c16, %c0_13], %13 {strides = array<i32>} : memref<72x256xf32, #tpu.memory_space<vmem>>, vector<8x256xf32>,
    %c366_i32 = arith.constant 366 : i32
    %15 = tpu.dynamic_rotate %6 by %c366_i32 dim 1 : vector<8x384xf32>, i32 -> vector<8x384xf32>
    %16 = vector.extract_strided_slice %15 {offsets = [0, 0], sizes = [8, 256], strides = [1, 1]} : vector<8x384xf32> to vector<8x256xf32>
    %c24 = arith.constant 24 : index
    %c0_14 = arith.constant 0 : index
    %17 = vector.load %arg9[%c24, %c0_14] : memref<72x256xf32, #tpu.memory_space<vmem>>, vector<8x256xf32>
    tpu.vector_store %arg9[%c24, %c0_14], %16 {strides = array<i32>} : memref<72x256xf32, #tpu.memory_space<vmem>>, vector<8x256xf32>,
    %c365_i32 = arith.constant 365 : i32
    %18 = tpu.dynamic_rotate %6 by %c365_i32 dim 1 : vector<8x384xf32>, i32 -> vector<8x384xf32>
    %19 = vector.extract_strided_slice %18 {offsets = [0, 0], sizes = [8, 256], strides = [1, 1]} : vector<8x384xf32> to vector<8x256xf32>
    %c32 = arith.constant 32 : index
    %c0_15 = arith.constant 0 : index
    %20 = vector.load %arg9[%c32, %c0_15] : memref<72x256xf32, #tpu.memory_space<vmem>>, vector<8x256xf32>
    tpu.vector_store %arg9[%c32, %c0_15], %19 {strides = array<i32>} : memref<72x256xf32, #tpu.memory_space<vmem>>, vector<8x256xf32>,
    %c364_i32 = arith.constant 364 : i32
    %21 = tpu.dynamic_rotate %6 by %c364_i32 dim 1 : vector<8x384xf32>, i32 -> vector<8x384xf32>
    %22 = vector.extract_strided_slice %21 {offsets = [0, 0], sizes = [8, 256], strides = [1, 1]} : vector<8x384xf32> to vector<8x256xf32>
    %c40 = arith.constant 40 : index
    %c0_16 = arith.constant 0 : index
    %23 = vector.load %arg9[%c40, %c0_16] : memref<72x256xf32, #tpu.memory_space<vmem>>, vector<8x256xf32>
    tpu.vector_store %arg9[%c40, %c0_16], %22 {strides = array<i32>} : memref<72x256xf32, #tpu.memory_space<vmem>>, vector<8x256xf32>,
    %c348_i32 = arith.constant 348 : i32
    %24 = tpu.dynamic_rotate %6 by %c348_i32 dim 1 : vector<8x384xf32>, i32 -> vector<8x384xf32>
    %25 = vector.extract_strided_slice %24 {offsets = [0, 0], sizes = [8, 256], strides = [1, 1]} : vector<8x384xf32> to vector<8x256xf32>
    %c48 = arith.constant 48 : index
    %c0_17 = arith.constant 0 : index
    %26 = vector.load %arg9[%c48, %c0_17] : memref<72x256xf32, #tpu.memory_space<vmem>>, vector<8x256xf32>
    tpu.vector_store %arg9[%c48, %c0_17], %25 {strides = array<i32>} : memref<72x256xf32, #tpu.memory_space<vmem>>, vector<8x256xf32>,
    %c347_i32 = arith.constant 347 : i32
    %27 = tpu.dynamic_rotate %6 by %c347_i32 dim 1 : vector<8x384xf32>, i32 -> vector<8x384xf32>
    %28 = vector.extract_strided_slice %27 {offsets = [0, 0], sizes = [8, 256], strides = [1, 1]} : vector<8x384xf32> to vector<8x256xf32>
    %c56 = arith.constant 56 : index
    %c0_18 = arith.constant 0 : index
    %29 = vector.load %arg9[%c56, %c0_18] : memref<72x256xf32, #tpu.memory_space<vmem>>, vector<8x256xf32>
    tpu.vector_store %arg9[%c56, %c0_18], %28 {strides = array<i32>} : memref<72x256xf32, #tpu.memory_space<vmem>>, vector<8x256xf32>,
    %c346_i32 = arith.constant 346 : i32
    %30 = tpu.dynamic_rotate %6 by %c346_i32 dim 1 : vector<8x384xf32>, i32 -> vector<8x384xf32>
    %31 = vector.extract_strided_slice %30 {offsets = [0, 0], sizes = [8, 256], strides = [1, 1]} : vector<8x384xf32> to vector<8x256xf32>
    %c64 = arith.constant 64 : index
    %c0_19 = arith.constant 0 : index
    %32 = vector.load %arg9[%c64, %c0_19] : memref<72x256xf32, #tpu.memory_space<vmem>>, vector<8x256xf32>
    tpu.vector_store %arg9[%c64, %c0_19], %31 {strides = array<i32>} : memref<72x256xf32, #tpu.memory_space<vmem>>, vector<8x256xf32>,
    %c0_20 = arith.constant 0 : index
    %c0_21 = arith.constant 0 : index
    %33 = vector.load %arg5[%c0_20, %c0_21] : memref<8x72xf32, #tpu.memory_space<vmem>>, vector<8x72xf32>
    %c0_22 = arith.constant 0 : index
    %c0_23 = arith.constant 0 : index
    %34 = vector.load %arg9[%c0_22, %c0_23] : memref<72x256xf32, #tpu.memory_space<vmem>>, vector<72x256xf32>
    %cst = arith.constant dense<0.000000e+00> : vector<8x256xf32>
    %35 = tpu.matmul %33, %34, %cst {dimension_numbers = #tpu.dot_dimension_numbers<[1], [0], [0], [1], [0, 0, 1, 1], [], []>} : vector<8x72xf32>, vector<72x256xf32>, vector<8x256xf32> -> vector<8x256xf32>
    %c0_24 = arith.constant 0 : index
    %c0_25 = arith.constant 0 : index
    %36 = vector.load %arg6[%c0_24, %c0_25] : memref<8x1xf32, #tpu.memory_space<vmem>>, vector<8x1xf32>
    %37 = vector.broadcast %36 : vector<8x1xf32> to vector<8x256xf32>
    %38 = arith.addf %35, %37 : vector<8x256xf32>
    %c0_26 = arith.constant 0 : index
    %c0_27 = arith.constant 0 : index
    %c0_28 = arith.constant 0 : index
    %39 = vector.load %arg7[%c0_26, %c0_27, %c0_28] : memref<1x8x256xf32, #tpu.memory_space<vmem>>, vector<1x8x256xf32>
    %40 = vector.shape_cast %39 : vector<1x8x256xf32> to vector<8x256xf32>
    %41 = vector.shape_cast %38 : vector<8x256xf32> to vector<1x8x256xf32>
    tpu.vector_store %arg7[%c0_26, %c0_27, %c0_28], %41 {strides = array<i32>} : memref<1x8x256xf32, #tpu.memory_space<vmem>>, vector<1x8x256xf32>,
    return
  }
  func.func @transform_0(%arg0: i32, %arg1: i32, %arg2: i32) -> (i32, i32, i32) {
    %c0_i32 = arith.constant 0 : i32
    %c0_i32_0 = arith.constant 0 : i32
    return %arg0, %c0_i32, %arg2 : i32, i32, i32
  }
  func.func @transform_1(%arg0: i32, %arg1: i32, %arg2: i32) -> (i32, i32, i32) {
    %c1_i32 = arith.constant 1 : i32
    %0 = arith.addi %arg2, %c1_i32 : i32
    %c2_i32 = arith.constant 2 : i32
    %1 = arith.muli %0, %c2_i32 : i32
    %c0_i32 = arith.constant 0 : i32
    %c0_i32_0 = arith.constant 0 : i32
    return %arg0, %c0_i32, %1 : i32, i32, i32
  }
  func.func @transform_2(%arg0: i32, %arg1: i32, %arg2: i32) -> (i32, i32) {
    %c0_i32 = arith.constant 0 : i32
    %c0_i32_0 = arith.constant 0 : i32
    return %arg1, %c0_i32 : i32, i32
  }
  func.func @transform_3(%arg0: i32, %arg1: i32, %arg2: i32) -> (i32, i32) {
    %c0_i32 = arith.constant 0 : i32
    %c0_i32_0 = arith.constant 0 : i32
    return %arg1, %c0_i32 : i32, i32
  }
  func.func @transform_4(%arg0: i32, %arg1: i32, %arg2: i32) -> (i32, i32, i32) {
    %c0_i32 = arith.constant 0 : i32
    return %arg0, %arg1, %arg2 : i32, i32, i32
  }
}

</mosaic_0001>

<bundles_post_ra>
// kernel: depthwise_conv.1
= control target key start
LH: loop header
LB: loop body
LE: loop exit
PB: predicated region body
PF: predicated region fallthrough
CT: control target
= control target key end

     0   :  { %s917_s15 = smov 0   ;;  %s919_s16 = smov 0   ;;  %s1001_s0 = inlined_call_operand.vmem [shape: f32[2,8,640], index: 0, kind: input, shape index: {}, may-alias: {0,1}]   ;;  %s1002_s1 = inlined_call_operand.vmem [shape: f32[2,8,640], index: 1, kind: input, shape index: {}, may-alias: {0,1}]   ;;  %s1003_s2 = inlined_call_operand.vmem [shape: f32[8,72], index: 2, kind: input, shape index: {}]   ;;  %s1004_s3 = inlined_call_operand.vmem [shape: f32[8,1], index: 3, kind: input, shape index: {}]   ;;  %s1005_s4 = inlined_call_operand.vmem [shape: f32[2,8,512], index: 4, kind: output, shape index: {}]  }
   0x1   :  { %s921_s17 = smov 0   ;;  %s923_s18 = smov 0  }
   0x2   :  { %s925_s19 = smov 0  }
   0x3 LB: > { %s26_s20 = sadd.s32 1, %s872_s17  ;;  %s33_s21 = sadd.s32 1, %s876_s18  ;;  %s880_s19 = sphi %s925_s19, %s14_s19   ;;  %s876_s18 = sphi %s923_s18, %s1009_s18   ;;  %s872_s17 = sphi %s921_s17, %s1008_s17   ;;  %s868_s16 = sphi %s919_s16, %s1007_s16   ;;  %s864_s15 = sphi %s917_s15, %s1006_s15  }
   0x4   : > { %p27_p0 = scmp.ge.s32.totalorder %s26_s20, 2  ;;  %p721_p1 = scmp.ge.s32.totalorder %s880_s19, 1 }
   0x5   : > { %p241_p2 = scmp.lt.s32.totalorder %s880_s19, 5 }
   0x6   : > { %s1011_s20 = smov (%p27_p0, %s26_s20), 0  ;;  %s1013_s21 = smov (!%p27_p0, %s33_s21), %s876_s18 }
   0x7   : > { %p242_p3 = pnand %p721_p1, %p241_p2  ;;  %p35_p4 = scmp.ge.s32.totalorder %s1013_s21, 2 }
   0x8   : > { %s947_s22 = sshll.u32 (!%p242_p3), %s864_s15, 1  ;;  %p306_p5 = scmp.lt.s32.totalorder (!%p242_p3), %s868_s16, 1  ;;  %v889_v4 = vmov (!%p242_p3), 0.0   ;;  %v890_v5 = vmov (!%p242_p3), 0   ;;  %v473_v6 = vld [vmem:[%s1004_s3] sm:$0xff] (!%p242_p3)  ;;  %v370_v7 = vlaneseq (!%p242_p3)  ;;  %vm479_vm8 = vcmask (!%p242_p3), 588800  }
   0x9   : > { %s1015_s21 = smov (%p35_p4, %s1013_s21), 0  ;;  %245 = sbr.rel (%p242_p3) target bundleno = 391 (0x187), region = 36 }
   0xa   : > { %p308_p6 = scmp.lt.s32.totalorder (!%p242_p3), %s947_s22, 4  ;;  %s737_s23 = sadd.s32 (!%p242_p3), 2, %s947_s22  ;;  %547 = vmatprep.mubr.f32.mxu0 (!%p242_p3), %v889_v4  ;;  %840 = vset.pattern.permute.xlu1 (!%p242_p3), %v890_v5  ;;  %v969_v8 = vand.u32 (!%p242_p3), 127, %v370_v7  ;;  %v454_v63 = vld [vmem:[%s1003_s2] sm:$0xff] (!%p242_p3) }
   0xb   : > { %p323_p7 = scmp.lt.s32.totalorder (!%p242_p3), %s737_s23, 4  ;;  %s882_s10 = smov (!%p242_p3), 126   ;;  %841 = vset.pattern.permute.xlu0 (!%p242_p3), %v890_v5 }
   0xc   : > { %s883_s11 = smov (!%p242_p3), 127   ;;  %s884_s12 = smov (!%p242_p3), 110   ;;  %vm372_vm0 = vcmp.lt.s32.totalorder (!%p242_p3), %v969_v8, 127  ;;  %vm394_vm1 = vcmp.lt.s32.totalorder (!%p242_p3), %v969_v8, 110  ;;  %vm383_vm2 = vcmp.lt.s32.totalorder (!%p242_p3), %v969_v8, 126  ;;  %vm416_vm3 = vcmp.lt.s32.totalorder (!%p242_p3), %v969_v8, 108 }
   0xd   : > { %s885_s13 = smov (!%p242_p3), 108   ;;  %s886_s14 = smov (!%p242_p3), 109   ;;  %vm405_vm4 = vcmp.lt.s32.totalorder (!%p242_p3), %v969_v8, 109  ;;  %vm438_vm5 = vcmp.lt.s32.totalorder (!%p242_p3), %v969_v8, 91  ;;  %vm427_vm6 = vcmp.lt.s32.totalorder (!%p242_p3), %v969_v8, 92  ;;  %vm449_vm7 = vcmp.lt.s32.totalorder (!%p242_p3), %v969_v8, 90 }
   0xe   : > { %s887_s15 = smov (!%p242_p3), 91   ;;  %p344_p8 = scmp.lt.s32.totalorder (!%p242_p3), %s947_s22, 3 }
  0x10   : > { %s1017_s16 = smov (!%p306_p5, %s868_s16), 1  ;;  %s1019_s23 = smov (!%p323_p7, %s737_s23), 4 }
  0x11   : > { %s309_s24 = scalar_select %p308_p6, %s947_s22, 4 }
  0x12   : > { %s754_s25 = smul.u32 5, %s1017_s16  ;;  %s1021_s22 = smov (!%p344_p8, %s947_s22), 3 }
  0x14   : > { %s311_s26 = sadd.s32 %s754_s25, %s309_s24  ;;  %s326_s5 = sadd.s32 %s754_s25, %s1019_s23 }
  0x15   : > { %s723_s27 = sshll.u32 %s311_s26, 3  ;;  %s725_s6 = sshll.u32 %s326_s5, 3 }
  0x16   : > { %s313_s30 = scalar_lea.vmem %s1001_s0, %s723_s27  ;;  %s328_s9 = scalar_lea.vmem %s1002_s1, %s725_s6 }
  0x17   : > { %v354_v0 = vld [vmem:[%s313_s30 + $0x8] sm:$0xff]  ;;  %v357_v1 = vld [vmem:[%s328_s9] sm:$0xff]  ;;  %s888_s23 = smov 92   ;;  %s891_s24 = smov 90  }
  0x18   : > { %v810_v2 = vpack.i.bf16 %v357_v1, %v354_v0  ;;  %v353_v3 = vld [vmem:[%s313_s30] sm:$0xff]  ;;  %s727_s27 = sshll.u32 %s1017_s16, 2 }
  0x19   : > { %s967_s28 = sadd.s32 %s727_s27, %s1021_s22 }
  0x1a   : > { %811 = vrot.lane.b32.xlu1 %v810_v2, %s882_s10  ;;  %806 = vrot.lane.b32.xlu0 %v810_v2, %s883_s11  ;;  %s728_s29 = sshll.u32 %s967_s28, 3 }
  0x1b   : > { %s351_s6 = scalar_lea.vmem %s1005_s4, %s728_s29 }
  0x1e   : > { %816 = vrot.lane.b32.xlu1 %v810_v2, %s884_s12  ;;  %364 = vrot.lane.b32.xlu0 %v353_v3, %s883_s11 }
  0x22   : > { %388 = vrot.lane.b32.xlu1 %v353_v3, %s884_s12  ;;  %377 = vrot.lane.b32.xlu0 %v353_v3, %s882_s10 }
  0x26   : > { %826 = vrot.lane.b32.xlu1 %v810_v2, %s885_s13  ;;  %821 = vrot.lane.b32.xlu0 %v810_v2, %s886_s14 }
  0x2a   : > { %410 = vrot.lane.b32.xlu1 %v353_v3, %s885_s13  ;;  %399 = vrot.lane.b32.xlu0 %v353_v3, %s886_s14 }
  0x2e   : > { %836 = vrot.lane.b32.xlu1 %v810_v2, %s887_s15  ;;  %831 = vrot.lane.b32.xlu0 %v810_v2, %s888_s23 }
  0x32   : > { %432 = vrot.lane.b32.xlu1 %v353_v3, %s887_s15  ;;  %421 = vrot.lane.b32.xlu0 %v353_v3, %s888_s23 }
  0x36   : > { %447 = vrot.lane.b32.xlu1 %v357_v1, %s891_s24  ;;  %445 = vrot.lane.b32.xlu0 %v354_v0, %s891_s24 }
  0x3a   : > { %443 = vrot.lane.b32.xlu0 %v353_v3, %s891_s24  ;;  %476 = vperm.xlu1 %840, %v473_v6  }
  0x8c   : > { %v812_v9 = vpop.permute.xlu1 %811  ;;  %v807_v10 = vpop.permute.xlu0 %806 }
  0x8d   : > { %v809_v11 = vunpack.i.h.bf16 %v807_v10  ;;  %v808_v12 = vunpack.i.l.bf16 %v807_v10  ;;  %v814_v13 = vunpack.i.h.bf16 %v812_v9  ;;  %v813_v14 = vunpack.i.l.bf16 %v812_v9 }
  0x8f   : > { %v373_v15 = vsel %vm372_vm0, %v808_v12, %v809_v11  ;;  %v384_v23 = vsel %vm383_vm2, %v813_v14, %v814_v13 }
  0x90   : > { %v817_v16 = vpop.permute.xlu1 %816  ;;  %v365_v17 = vpop.permute.xlu0 %364  ;;  %v738_v18 = vpack.c.bf16 %v373_v15, %v354_v0 }
  0x91   : > { %v819_v19 = vunpack.i.h.bf16 %v817_v16  ;;  %v818_v20 = vunpack.i.l.bf16 %v817_v16  ;;  %v374_v21 = vsel %vm372_vm0, %v365_v17, %v808_v12 }
  0x92   : > { %739 = vmatprep.subr.bf16.mxu0 %v738_v18  ;;  %v740_v22 = vpack.c.bf16 %v374_v21, %v353_v3 }
  0x93   : > { %v395_v24 = vsel %vm394_vm1, %v818_v20, %v819_v19 }
  0x94   : > { %v389_v25 = vpop.permute.xlu1 %388  ;;  %741 = vmatpush1.bf16.msra.mxu0 %v740_v22  ;;  %v378_v26 = vpop.permute.xlu0 %377  ;;  %v742_v27 = vpack.c.bf16 %v395_v24, %v384_v23 }
  0x95   : > { %v396_v28 = vsel %vm394_vm1, %v389_v25, %v818_v20  ;;  %v385_v29 = vsel %vm383_vm2, %v378_v26, %v813_v14 }
  0x96   : > { %v744_v30 = vpack.c.bf16 %v396_v28, %v385_v29  ;;  %743 = vmatprep.subr.bf16.mxu0 %v742_v27 }
  0x98   : > { %v827_v31 = vpop.permute.xlu1 %826  ;;  %745 = vmatpush1.bf16.msra.mxu0 %v744_v30  ;;  %v822_v32 = vpop.permute.xlu0 %821 }
  0x99   : > { %v829_v33 = vunpack.i.h.bf16 %v827_v31  ;;  %v828_v34 = vunpack.i.l.bf16 %v827_v31  ;;  %v824_v35 = vunpack.i.h.bf16 %v822_v32  ;;  %v823_v36 = vunpack.i.l.bf16 %v822_v32 }
  0x9b   : > { %v406_v37 = vsel %vm405_vm4, %v823_v36, %v824_v35  ;;  %v417_v38 = vsel %vm416_vm3, %v828_v34, %v829_v33 }
  0x9c   : > { %v411_v39 = vpop.permute.xlu1 %410  ;;  %v400_v40 = vpop.permute.xlu0 %399  ;;  %v746_v41 = vpack.c.bf16 %v417_v38, %v406_v37 }
  0x9d   : > { %v418_v42 = vsel %vm416_vm3, %v411_v39, %v828_v34  ;;  %v407_v43 = vsel %vm405_vm4, %v400_v40, %v823_v36 }
  0x9e   : > { %v748_v44 = vpack.c.bf16 %v418_v42, %v407_v43  ;;  %747 = vmatprep.subr.bf16.mxu0 %v746_v41 }
  0xa0   : > { %v837_v45 = vpop.permute.xlu1 %836  ;;  %v832_v46 = vpop.permute.xlu0 %831  ;;  %749 = vmatpush1.bf16.msra.mxu0 %v748_v44 }
  0xa1   : > { %v839_v47 = vunpack.i.h.bf16 %v837_v45  ;;  %v838_v48 = vunpack.i.l.bf16 %v837_v45  ;;  %v834_v49 = vunpack.i.h.bf16 %v832_v46  ;;  %v833_v50 = vunpack.i.l.bf16 %v832_v46 }
  0xa3   : > { %v428_v51 = vsel %vm427_vm6, %v833_v50, %v834_v49  ;;  %v439_v52 = vsel %vm438_vm5, %v838_v48, %v839_v47 }
  0xa4   : > { %v433_v53 = vpop.permute.xlu1 %432  ;;  %v422_v54 = vpop.permute.xlu0 %421  ;;  %v750_v55 = vpack.c.bf16 %v439_v52, %v428_v51 }
  0xa5   : > { %v440_v56 = vsel %vm438_vm5, %v433_v53, %v838_v48  ;;  %v429_v57 = vsel %vm427_vm6, %v422_v54, %v833_v50 }
  0xa6   : > { %v752_v58 = vpack.c.bf16 %v440_v56, %v429_v57  ;;  %751 = vmatprep.subr.bf16.mxu0 %v750_v55 }
  0xa8   : > { %v448_v59 = vpop.permute.xlu1 %447  ;;  %v446_v60 = vpop.permute.xlu0 %445  ;;  %753 = vmatpush1.bf16.msra.mxu0 %v752_v58 }
  0xa9   : > { %v450_v61 = vsel %vm449_vm7, %v446_v60, %v448_v59 }
  0xaa   : > { %499 = vmatprep.subr.mxu0 %v450_v61 }
  0xac   : > { %v444_v62 = vpop.permute.xlu0 %443 }
  0xad   : > { %v451_v0 = vsel %vm449_vm7, %v444_v62, %v446_v60 }
  0xae   : > { %500 = vmatpush1.msra.mxu0 %v451_v0 }
  0xaf   : > { %729 = vmatmul.mubr.msk.f32.vlgmr.msra.gmra.mrb[0].mxu0 %vm479_vm8, %v454_v63 }
  0xb9   : > { %v477_v1 = vpop.permute.xlu1 %476 }
 0x182   : > { %v549_v2 = vpop.f32.mrb[0].mxu0 }
 0x183   : > { %v550_v3 = vadd.f32 %v549_v2, %v477_v1  ;;  %v551_v4 = vpop.f32.mrb[1].mxu0 }
 0x184   : > { %v552_v5 = vadd.f32 %v551_v4, %v477_v1 }
 0x185   : > { %554 = vst [vmem:[%s351_s6] sm:$0xff] %v550_v3 }
 0x186   : > { %555 = vst [vmem:[%s351_s6 + $0x8] sm:$0xff] %v552_v5 }
 0x187 PF: > { %s14_s19 = sadd.s32 1, %s880_s19   ;;  %s1006_s15 = smov %s872_s17 }
 0x188   : > { %p11_p9 = scmp.ge.s32.totalorder %s14_s19, 6   ;;  %s1007_s16 = smov %s876_s18 }
 0x189   : > { %s1008_s17 = smov %s1011_s20  ;;  %s1009_s18 = smov %s1015_s21 }
 0x18a   :  { %13 = sbr.rel (!%p11_p9) target bundleno = 3 (0x3), region = 75 }

</bundles_post_ra>
